<compile_context>
chip_gen: v7x
topology: tpu7x:2x2x1
jax: 0.10.0
libtpu: 0.0.40
codegen_flags: <defaults>
</compile_context>

<pallas_src>
import functools

import jax
import jax.numpy as jnp
from jax.experimental import pallas as pl
from jax.experimental.pallas import tpu as pltpu


def _make_divisible(ch: float, divisor: int = 8, min_ch: int = None) -> int:
    if min_ch is None:
        min_ch = divisor
    new_ch = max(min_ch, int(ch + divisor / 2) // divisor * divisor)
    if new_ch < 0.9 * ch:
        new_ch += divisor
    return new_ch


# ----------------------------------------------------------------------------
# Generation-aware budgets & block-size selection
# ----------------------------------------------------------------------------
def _gen_budgets():
    """(target_block_bytes, min_grid_steps, vmem_limit_bytes) for this chip."""
    vmem_cap = 128 << 20
    try:
        vmem_cap = int(getattr(pltpu.get_tpu_info(), "vmem_capacity_bytes", vmem_cap))
    except Exception:
        pass
    vmem_limit = (vmem_cap * 3) // 4        # headroom under physical VMEM
    target_block = vmem_limit // 6          # 2x(in) + 2x(out) buffers + slack
    # v7x-class (64 MiB VMEM/TC) has two TensorCores: keep >= 2 steps per core
    # so DMA/compute/writeback overlap across grid steps.
    min_grid = 4 if vmem_cap <= (64 << 20) else 1
    return target_block, min_grid, vmem_limit


def _choose_nb(n, per_image_bytes, target_bytes, min_grid, vmem_limit):
    """Images per grid step.  None => single image exceeds budget, use fallback."""
    want_grid = min(min_grid, n)
    valid = [d for d in range(1, n + 1)
             if n % d == 0
             and d * per_image_bytes <= target_bytes
             and n // d >= want_grid]
    if not valid:
        # One image already exceeds the preferred block size.  Accept the
        # oversized block while 2x(in)+2x(out) buffers still fit the scoped
        # VMEM limit with headroom; otherwise use the HW-tiled fallback.
        return 1 if 4 * per_image_bytes <= (vmem_limit * 3) // 4 else None
    mult8 = [d for d in valid if d % 8 == 0]
    return max(mult8) if mult8 else max(valid)


def _choose_hw_tile(c, hw, itemsize, target_bytes):
    """Lane-dim tile for the fallback path (multiple of 128, or the full HW)."""
    lanes_budget = max(128, (target_bytes // max(1, c * itemsize)) // 128 * 128)
    if lanes_budget >= hw:
        return hw
    return int(lanes_budget)


# ----------------------------------------------------------------------------
# Fused single-pass kernel (main path)
# ----------------------------------------------------------------------------
def _se_fused_kernel(x_ref, w1_ref, b1_ref, w2_ref, b2_ref, o_ref, *, inv_hw):
    # Pass 1 over the VMEM block: adaptive_avg_pool2d == mean over spatial dims.
    pooled = jnp.sum(x_ref[...].astype(jnp.float32), axis=-1) * inv_hw       # (Nb, C)
    # fc1 (1x1 conv C->S) + ReLU; fc2 (1x1 conv S->C) + hardsigmoid.
    s1 = jnp.dot(pooled, w1_ref[...], preferred_element_type=jnp.float32) + b1_ref[...]
    s1 = jnp.maximum(s1, 0.0)
    s2 = jnp.dot(s1, w2_ref[...], preferred_element_type=jnp.float32) + b2_ref[...]
    scale = jnp.clip((s2 + 3.0) * (1.0 / 6.0), 0.0, 1.0)                     # (Nb, C) f32
    # Pass 2: re-read the block (second VMEM read is essentially free; keeps
    # vreg pressure bounded), apply the gate in f32, one cast at the store.
    o_ref[...] = (x_ref[...].astype(jnp.float32) * scale[:, :, None]).astype(o_ref.dtype)


def _se_fused(xr, w1, b1, w2, b2, *, nb, vmem_limit):
    N, C, HW = xr.shape
    S = w1.shape[1]
    kernel = functools.partial(_se_fused_kernel, inv_hw=1.0 / float(HW))
    return pl.pallas_call(
        kernel,
        out_shape=jax.ShapeDtypeStruct((N, C, HW), xr.dtype),
        grid=(N // nb,),
        in_specs=[
            pl.BlockSpec((nb, C, HW), lambda n: (n, 0, 0)),
            pl.BlockSpec((C, S), lambda n: (0, 0)),
            pl.BlockSpec((1, S), lambda n: (0, 0)),
            pl.BlockSpec((S, C), lambda n: (0, 0)),
            pl.BlockSpec((1, C), lambda n: (0, 0)),
        ],
        out_specs=pl.BlockSpec((nb, C, HW), lambda n: (n, 0, 0)),
        compiler_params=pltpu.CompilerParams(
            dimension_semantics=("parallel",),
            vmem_limit_bytes=vmem_limit,
        ),
    )(xr, w1, b1, w2, b2)


# ----------------------------------------------------------------------------
# HW-tiled fallback (one image per step too big for a single block)
# ----------------------------------------------------------------------------
def _se_pool_kernel(x_ref, pooled_ref, *, hw, hw_tile):
    j = pl.program_id(1)

    @pl.when(j == 0)
    def _():
        pooled_ref[...] = jnp.zeros_like(pooled_ref)

    x = x_ref[...].astype(jnp.float32)                                  # (1, C, hw_tile)
    # Mask the lane tail of the last spatial tile (OOB reads are garbage).
    col = j * hw_tile + jax.lax.broadcasted_iota(jnp.int32, x.shape, 2)
    x = jnp.where(col < hw, x, 0.0)
    pooled_ref[...] += jnp.sum(x, axis=-1)[:, None, :]                  # (1, 1, C)


def _se_apply_kernel(x_ref, scale_ref, o_ref):
    # x_ref: (1, C, hw_tile); scale_ref: (1, C, 1) f32 -> broadcast along lanes.
    o_ref[...] = (x_ref[...].astype(jnp.float32) * scale_ref[...]).astype(o_ref.dtype)


def _se_fallback(xr, w1, b1, w2, b2, *, target_block, vmem_limit):
    N, C, HW = xr.shape
    hw_tile = _choose_hw_tile(C, HW, xr.dtype.itemsize, target_block)
    n_hw = pl.cdiv(HW, hw_tile)

    pool_kernel = functools.partial(_se_pool_kernel, hw=HW, hw_tile=hw_tile)
    pooled = pl.pallas_call(
        pool_kernel,
        out_shape=jax.ShapeDtypeStruct((N, 1, C), jnp.float32),
        grid=(N, n_hw),
        in_specs=[pl.BlockSpec((1, C, hw_tile), lambda n, j: (n, 0, j))],
        out_specs=pl.BlockSpec((1, 1, C), lambda n, j: (n, 0, 0)),
        compiler_params=pltpu.CompilerParams(
            dimension_semantics=("parallel", "arbitrary"),
            vmem_limit_bytes=vmem_limit,
        ),
    )(xr)
    pooled = pooled[:, 0, :] * (1.0 / float(HW))                        # (N, C)

    # Tiny FC chain + hardsigmoid on (N, C): negligible next to the x traffic.
    s1 = jnp.maximum(pooled @ w1 + b1, 0.0)
    s2 = s1 @ w2 + b2
    scale = jnp.clip((s2 + 3.0) * (1.0 / 6.0), 0.0, 1.0)[:, :, None]    # (N, C, 1) f32

    return pl.pallas_call(
        _se_apply_kernel,
        out_shape=jax.ShapeDtypeStruct((N, C, HW), xr.dtype),
        grid=(N, n_hw),
        in_specs=[pl.BlockSpec((1, C, hw_tile), lambda n, j: (n, 0, j)),
                  pl.BlockSpec((1, C, 1), lambda n, j: (n, 0, 0))],
        out_specs=pl.BlockSpec((1, C, hw_tile), lambda n, j: (n, 0, j)),
        compiler_params=pltpu.CompilerParams(
            dimension_semantics=("parallel", "parallel"),
            vmem_limit_bytes=vmem_limit,
        ),
    )(xr, scale)


# ----------------------------------------------------------------------------
# Public wrapper
# ----------------------------------------------------------------------------
def squeeze_excitation(x, w1, b1, w2, b2):
    """x: (N, C, H, W).  w1: (C, S), b1: (1, S), w2: (S, C), b2: (1, C)."""
    N, C, H, W = x.shape
    HW = H * W
    xr = x.reshape(N, C, HW)

    target_block, min_grid, vmem_limit = _gen_budgets()
    per_image_bytes = C * HW * xr.dtype.itemsize
    nb = _choose_nb(N, per_image_bytes, target_block, min_grid, vmem_limit)

    if nb is None:
        out = _se_fallback(xr, w1, b1, w2, b2,
                           target_block=target_block, vmem_limit=vmem_limit)
    else:
        out = _se_fused(xr, w1, b1, w2, b2, nb=nb, vmem_limit=vmem_limit)
    return out.reshape(N, C, H, W)


def se_reference(x, w1, b1, w2, b2):
    pooled = jnp.mean(x, axis=(2, 3))                 # (N, C)
    s1 = jnp.maximum(pooled @ w1 + b1, 0.0)           # (N, S)
    s2 = s1 @ w2 + b2                                 # (N, C)
    scale = jnp.clip((s2 + 3.0) / 6.0, 0.0, 1.0)
    return x * scale[:, :, None, None]


if __name__ == "__main__":
    key = jax.random.PRNGKey(0)
    kx, k1, k2, k3, k4, kx2, kx3 = jax.random.split(key, 7)

    # Shapes consistent with the module: N=2, C=16, H=W=16 -> S=8
    N, C, H, W = 2, 16, 16, 16
    squeeze_factor = 4
    S = _make_divisible(C // squeeze_factor, 8)       # -> 8

    x = jax.random.normal(kx, (N, C, H, W), dtype=jnp.float32)

    # fc1: Conv2d(C, S, 1) weight (S, C, 1, 1) -> stored pre-transposed as (C, S)
    # fc2: Conv2d(S, C, 1) weight (C, S, 1, 1) -> stored pre-transposed as (S, C)
    w1 = jax.random.normal(k1, (C, S), dtype=jnp.float32) * 0.1
    b1 = jax.random.normal(k2, (1, S), dtype=jnp.float32) * 0.1
    w2 = jax.random.normal(k3, (S, C), dtype=jnp.float32) * 0.1
    b2 = jax.random.normal(k4, (1, C), dtype=jnp.float32) * 0.1

    out = jax.block_until_ready(squeeze_excitation(x, w1, b1, w2, b2))
    ref = se_reference(x, w1, b1, w2, b2)
    assert out.shape == x.shape
    assert jnp.allclose(out, ref, atol=1e-5, rtol=1e-5), "mismatch vs reference"

    # Non-128-multiple spatial extent (7x7): full-HW block, masked tail store.
    x2 = jax.random.normal(kx2, (N, C, 7, 7), dtype=jnp.float32)
    out2 = jax.block_until_ready(squeeze_excitation(x2, w1, b1, w2, b2))
    ref2 = se_reference(x2, w1, b1, w2, b2)
    assert out2.shape == x2.shape
    assert jnp.allclose(out2, ref2, atol=1e-5, rtol=1e-5), "mismatch (7x7)"

    # Exercise the HW-tiled fallback path at a small shape by forcing a tiny
    # block budget: HW=169 -> hw_tile=128, 2 spatial tiles, masked tail.
    x3 = jax.random.normal(kx3, (N, C, 13, 13), dtype=jnp.float32)
    xr3 = x3.reshape(N, C, 13 * 13)
    out3 = _se_fallback(xr3, w1, b1, w2, b2,
                        target_block=C * 128 * 4, vmem_limit=48 << 20)
    out3 = jax.block_until_ready(out3).reshape(N, C, 13, 13)
    ref3 = se_reference(x3, w1, b1, w2, b2)
    assert jnp.allclose(out3, ref3, atol=1e-5, rtol=1e-5), "mismatch (fallback)"

    print("KERNEL_OK")
</pallas_src>

<mosaic_0001>
module attributes {stable_mosaic.version = 11 : i64} {
  func.func @_se_fused_kernel(%arg0: i32, %arg1: memref<2x16x256xf32, #tpu.memory_space<vmem>>, %arg2: memref<16x8xf32, #tpu.memory_space<vmem>>, %arg3: memref<1x8xf32, #tpu.memory_space<vmem>>, %arg4: memref<8x16xf32, #tpu.memory_space<vmem>>, %arg5: memref<1x16xf32, #tpu.memory_space<vmem>>, %arg6: memref<2x16x256xf32, #tpu.memory_space<vmem>>) attributes {dimension_semantics = [#tpu.dimension_semantics<parallel>], iteration_bounds = array<i64: 1>, scalar_prefetch = 0 : i64, scratch_operands = 0 : i64, tpu.core_type = #tpu.core_type<tc>, window_params = [{transform_indices = @transform_0, window_bounds = array<i64: 2, 16, 256>}, {pipeline_mode = #tpu.pipeline_mode<synchronous>, transform_indices = @transform_1, window_bounds = array<i64: 16, 8>}, {pipeline_mode = #tpu.pipeline_mode<synchronous>, transform_indices = @transform_2, window_bounds = array<i64: 1, 8>}, {pipeline_mode = #tpu.pipeline_mode<synchronous>, transform_indices = @transform_3, window_bounds = array<i64: 8, 16>}, {pipeline_mode = #tpu.pipeline_mode<synchronous>, transform_indices = @transform_4, window_bounds = array<i64: 1, 16>}, {transform_indices = @transform_5, window_bounds = array<i64: 2, 16, 256>}]} {
    %c0 = arith.constant 0 : index
    %c0_0 = arith.constant 0 : index
    %c0_1 = arith.constant 0 : index
    %0 = vector.load %arg1[%c0, %c0_0, %c0_1] : memref<2x16x256xf32, #tpu.memory_space<vmem>>, vector<2x16x256xf32>
    %cst = arith.constant dense<0.000000e+00> : vector<2x16xf32>
    %1 = vector.multi_reduction <add>, %0, %cst [2] : vector<2x16x256xf32> to vector<2x16xf32>
    %cst_2 = arith.constant 3.906250e-03 : f32
    %2 = vector.broadcast %cst_2 : f32 to vector<2x16xf32>
    %3 = arith.mulf %1, %2 : vector<2x16xf32>
    %c0_3 = arith.constant 0 : index
    %c0_4 = arith.constant 0 : index
    %4 = vector.load %arg2[%c0_3, %c0_4] : memref<16x8xf32, #tpu.memory_space<vmem>>, vector<16x8xf32>
    %cst_5 = arith.constant dense<0.000000e+00> : vector<2x8xf32>
    %5 = tpu.matmul %3, %4, %cst_5 {dimension_numbers = #tpu.dot_dimension_numbers<[1], [0], [0], [1], [0, 0, 1, 1], [], []>} : vector<2x16xf32>, vector<16x8xf32>, vector<2x8xf32> -> vector<2x8xf32>
    %c0_6 = arith.constant 0 : index
    %c0_7 = arith.constant 0 : index
    %6 = vector.load %arg3[%c0_6, %c0_7] : memref<1x8xf32, #tpu.memory_space<vmem>>, vector<1x8xf32>
    %7 = vector.broadcast %6 : vector<1x8xf32> to vector<2x8xf32>
    %8 = arith.addf %5, %7 : vector<2x8xf32>
    %cst_8 = arith.constant 0.000000e+00 : f32
    %9 = vector.broadcast %cst_8 : f32 to vector<2x8xf32>
    %10 = arith.maximumf %8, %9 : vector<2x8xf32>
    %c0_9 = arith.constant 0 : index
    %c0_10 = arith.constant 0 : index
    %11 = vector.load %arg4[%c0_9, %c0_10] : memref<8x16xf32, #tpu.memory_space<vmem>>, vector<8x16xf32>
    %cst_11 = arith.constant dense<0.000000e+00> : vector<2x16xf32>
    %12 = tpu.matmul %10, %11, %cst_11 {dimension_numbers = #tpu.dot_dimension_numbers<[1], [0], [0], [1], [0, 0, 1, 1], [], []>} : vector<2x8xf32>, vector<8x16xf32>, vector<2x16xf32> -> vector<2x16xf32>
    %c0_12 = arith.constant 0 : index
    %c0_13 = arith.constant 0 : index
    %13 = vector.load %arg5[%c0_12, %c0_13] : memref<1x16xf32, #tpu.memory_space<vmem>>, vector<1x16xf32>
    %14 = vector.broadcast %13 : vector<1x16xf32> to vector<2x16xf32>
    %15 = arith.addf %12, %14 : vector<2x16xf32>
    %cst_14 = arith.constant 3.000000e+00 : f32
    %16 = vector.broadcast %cst_14 : f32 to vector<2x16xf32>
    %17 = arith.addf %15, %16 : vector<2x16xf32>
    %cst_15 = arith.constant 0.166666672 : f32
    %18 = vector.broadcast %cst_15 : f32 to vector<2x16xf32>
    %19 = arith.mulf %17, %18 : vector<2x16xf32>
    %cst_16 = arith.constant 0.000000e+00 : f32
    %cst_17 = arith.constant 1.000000e+00 : f32
    %20 = vector.broadcast %cst_16 : f32 to vector<2x16xf32>
    %21 = arith.maximumf %20, %19 : vector<2x16xf32>
    %22 = vector.broadcast %cst_17 : f32 to vector<2x16xf32>
    %23 = arith.minimumf %22, %21 : vector<2x16xf32>
    %c0_18 = arith.constant 0 : index
    %c0_19 = arith.constant 0 : index
    %c0_20 = arith.constant 0 : index
    %24 = vector.load %arg1[%c0_18, %c0_19, %c0_20] : memref<2x16x256xf32, #tpu.memory_space<vmem>>, vector<2x16x256xf32>
    %25 = vector.shape_cast %23 : vector<2x16xf32> to vector<2x16x1xf32>
    %26 = vector.broadcast %25 : vector<2x16x1xf32> to vector<2x16x256xf32>
    %27 = arith.mulf %24, %26 : vector<2x16x256xf32>
    %c0_21 = arith.constant 0 : index
    %c0_22 = arith.constant 0 : index
    %c0_23 = arith.constant 0 : index
    %28 = vector.load %arg6[%c0_21, %c0_22, %c0_23] : memref<2x16x256xf32, #tpu.memory_space<vmem>>, vector<2x16x256xf32>
    tpu.vector_store %arg6[%c0_21, %c0_22, %c0_23], %27 {strides = array<i32>} : memref<2x16x256xf32, #tpu.memory_space<vmem>>, vector<2x16x256xf32>,
    return
  }
  func.func @transform_0(%arg0: i32) -> (i32, i32, i32) {
    %c0_i32 = arith.constant 0 : i32
    %c0_i32_0 = arith.constant 0 : i32
    %c0_i32_1 = arith.constant 0 : i32
    return %arg0, %c0_i32, %c0_i32_0 : i32, i32, i32
  }
  func.func @transform_1(%arg0: i32) -> (i32, i32) {
    %c0_i32 = arith.constant 0 : i32
    %c0_i32_0 = arith.constant 0 : i32
    %c0_i32_1 = arith.constant 0 : i32
    return %c0_i32, %c0_i32_0 : i32, i32
  }
  func.func @transform_2(%arg0: i32) -> (i32, i32) {
    %c0_i32 = arith.constant 0 : i32
    %c0_i32_0 = arith.constant 0 : i32
    %c0_i32_1 = arith.constant 0 : i32
    return %c0_i32, %c0_i32_0 : i32, i32
  }
  func.func @transform_3(%arg0: i32) -> (i32, i32) {
    %c0_i32 = arith.constant 0 : i32
    %c0_i32_0 = arith.constant 0 : i32
    %c0_i32_1 = arith.constant 0 : i32
    return %c0_i32, %c0_i32_0 : i32, i32
  }
  func.func @transform_4(%arg0: i32) -> (i32, i32) {
    %c0_i32 = arith.constant 0 : i32
    %c0_i32_0 = arith.constant 0 : i32
    %c0_i32_1 = arith.constant 0 : i32
    return %c0_i32, %c0_i32_0 : i32, i32
  }
  func.func @transform_5(%arg0: i32) -> (i32, i32, i32) {
    %c0_i32 = arith.constant 0 : i32
    %c0_i32_0 = arith.constant 0 : i32
    %c0_i32_1 = arith.constant 0 : i32
    return %arg0, %c0_i32, %c0_i32_0 : i32, i32, i32
  }
}

</mosaic_0001>

<bundles_post_ra>
// kernel: tpu_custom_call.1
= control target key start
LH: loop header
LB: loop body
LE: loop exit
PB: predicated region body
PF: predicated region fallthrough
CT: control target
= control target key end

     0   :  { %10 = vsyncpa [#allocation3], 0  ;;  %s691_s0 = inlined_call_operand.hbm [shape: f32[2,16,256], index: 0, kind: input, shape index: {}]   ;;  %s692_s1 = inlined_call_operand.hbm [shape: f32[16,8], index: 1, kind: input, shape index: {}]   ;;  %s693_s2 = inlined_call_operand.hbm [shape: f32[1,8], index: 2, kind: input, shape index: {}]   ;;  %s694_s3 = inlined_call_operand.hbm [shape: f32[8,16], index: 3, kind: input, shape index: {}]   ;;  %s695_s4 = inlined_call_operand.hbm [shape: f32[1,16], index: 4, kind: input, shape index: {}]   ;;  %s696_s5 = inlined_call_operand.hbm [shape: f32[2,16,256], index: 5, kind: output, shape index: {}]  }
   0x1   :  { %11 = vsyncpa [#allocation6], 0 }
   0x2   :  { %12 = vsyncpa [#allocation9], 0 }
   0x3   :  { %13 = vsyncpa [#allocation4], 0  ;;  %s538_s18 = smov [#allocation5]   ;;  %s398_s22 = scalar_lea.hbm %s692_s1, 256 }
   0x4   :  { %s31_s19 = sshll.u32 %s538_s18, 4  ;;  %p399_p0 = scmp.ne.s32.totalorder %s692_s1, %s398_s22  ;;  %s32_s19 = int_to_ptr.vmem [resolvable:$true] %s31_s19 }
   0x5   :  { %p402_p1 = scmp.lt.u32.totalorder %s398_s22, %s692_s1 }
   0x7   :  { %p404_p2 = pnand %p402_p1, %p399_p0 }
   0x9   :  { %407 = shalt.err (!%p404_p2)
}
   0xa   :  { %s408_s27 = scalar_lea.vmem %s32_s19, 256  ;;  %p413_p4 = scmp.lt.s32.totalorder %s32_s19, %s32_s19 }
   0xb   :  { %p409_p3 = scmp.ne.s32.totalorder %s32_s19, %s408_s27  ;;  %p414_p5 = scmp.lt.s32.totalorder %s408_s27, %s408_s27 }
   0xd   :  { %p415_p6 = por %p414_p5, %p413_p4 }
   0xf   :  { %p416_p7 = pnand %p415_p6, %p409_p3 }
  0x11   :  { %419 = shalt.err (!%p416_p7)
}
  0x12   :  { %s539_s28 = smov 128   ;;  %s540_s29 = smov 8  }
  0x13   :  { %37 = dma.hbm_to_vmem [thread:$0]  %s692_s1, 256, %s32_s19, [#allocation6], %s539_s28, %s539_s28, %s540_s29  }
  0x14   :  { %s541_s7 = smov [#allocation8]   ;;  %s542_s9 = smov [#allocation2]  }
  0x15   :  { %s54_s8 = sshll.u32 %s541_s7, 4  ;;  %s19_s10 = sshll.u32 %s542_s9, 4  ;;  %s55_s8 = int_to_ptr.vmem [resolvable:$true] %s54_s8  ;;  %s20_s10 = int_to_ptr.vmem [resolvable:$true] %s19_s10 }
  0x16   :  { %s420_s13 = scalar_lea.hbm %s694_s3, 128 }
  0x17   :  { %p421_p8 = scmp.ne.s32.totalorder %s694_s3, %s420_s13  ;;  %p424_p9 = scmp.lt.u32.totalorder %s420_s13, %s694_s3 }
  0x19   :  { %p426_p10 = pnand %p424_p9, %p421_p8 }
  0x1b   :  { %429 = shalt.err (!%p426_p10)
}
  0x1c   :  { %s430_s1 = scalar_lea.vmem %s55_s8, 128  ;;  %p435_p12 = scmp.lt.s32.totalorder %s55_s8, %s55_s8 }
  0x1d   :  { %p431_p11 = scmp.ne.s32.totalorder %s55_s8, %s430_s1  ;;  %p436_p13 = scmp.lt.s32.totalorder %s430_s1, %s430_s1 }
  0x1f   :  { %p437_p0 = por %p436_p13, %p435_p12 }
  0x21   :  { %p438_p1 = pnand %p437_p0, %p431_p11 }
  0x23   :  { %441 = shalt.err (!%p438_p1)
}
  0x24   :  { %57 = dma.hbm_to_vmem [thread:$0]  %s694_s3, 128, %s55_s8, [#allocation9]  }
  0x25   :  { %s442_s22 = scalar_lea.hbm %s691_s0, 1024 }
  0x26   :  { %p443_p2 = scmp.ne.s32.totalorder %s691_s0, %s442_s22  ;;  %p446_p3 = scmp.lt.u32.totalorder %s442_s22, %s691_s0 }
  0x28   :  { %p448_p4 = pnand %p446_p3, %p443_p2 }
  0x2a   :  { %451 = shalt.err (!%p448_p4)
}
  0x2b   :  { %s452_s27 = scalar_lea.vmem %s20_s10, 1024  ;;  %p457_p6 = scmp.lt.s32.totalorder %s20_s10, %s20_s10 }
  0x2c   :  { %p453_p5 = scmp.ne.s32.totalorder %s20_s10, %s452_s27  ;;  %p458_p7 = scmp.lt.s32.totalorder %s452_s27, %s452_s27 }
  0x2e   :  { %p459_p8 = por %p458_p7, %p457_p6 }
  0x30   :  { %p460_p9 = pnand %p459_p8, %p453_p5 }
  0x32   :  { %463 = shalt.err (!%p460_p9)
}
  0x33   :  { %s543_s3 = smov 256   ;;  %s544_s28 = smov 16  }
  0x34   :  { %25 = dma.hbm_to_vmem [thread:$0]  %s691_s0, 1024, %s20_s10, [#allocation3], %s543_s3, %s543_s3, %s544_s28  }
  0x35   :  { %s545_s6 = smov [#allocation7]   ;;  %s546_s8 = smov [#allocation10]  }
  0x36   :  { %s44_s7 = sshll.u32 %s545_s6, 4  ;;  %s64_s9 = sshll.u32 %s546_s8, 4  ;;  %s45_s7 = int_to_ptr.vmem [resolvable:$true] %s44_s7  ;;  %s65_s9 = int_to_ptr.vmem [resolvable:$true] %s64_s9 }
  0x37   :  { %s464_s13 = scalar_lea.hbm %s693_s2, 16 }
  0x38   :  { %p465_p10 = scmp.ne.s32.totalorder %s693_s2, %s464_s13  ;;  %p468_p11 = scmp.lt.u32.totalorder %s464_s13, %s693_s2 }
  0x3a   :  { %p470_p12 = pnand %p468_p11, %p465_p10 }
  0x3c   :  { %473 = shalt.err (!%p470_p12)
}
  0x3d   :  { %s474_s0 = scalar_lea.vmem %s45_s7, 16  ;;  %s478_s10 = scalar_lea.vmem %s45_s7, 32 }
  0x3e   :  { %p475_p13 = scmp.ne.s32.totalorder %s45_s7, %s474_s0  ;;  %p479_p0 = scmp.lt.s32.totalorder %s45_s7, %s45_s7 }
  0x3f   :  { %p480_p1 = scmp.lt.s32.totalorder %s478_s10, %s474_s0 }
  0x41   :  { %p481_p2 = por %p480_p1, %p479_p0 }
  0x43   :  { %p482_p3 = pnand %p481_p2, %p475_p13 }
  0x45   :  { %485 = shalt.err (!%p482_p3)
}
  0x46   :  { %47 = dma.hbm_to_vmem [thread:$0]  %s693_s2, 16, %s45_s7, [#allocation6]  }
  0x47   :  { %s486_s21 = scalar_lea.hbm %s695_s4, 16 }
  0x48   :  { %p487_p4 = scmp.ne.s32.totalorder %s695_s4, %s486_s21  ;;  %p490_p5 = scmp.lt.u32.totalorder %s486_s21, %s695_s4 }
  0x4a   :  { %p492_p6 = pnand %p490_p5, %p487_p4 }
  0x4c   :  { %495 = shalt.err (!%p492_p6)
}
  0x4d   :  { %s496_s26 = scalar_lea.vmem %s65_s9, 16  ;;  %s500_s27 = scalar_lea.vmem %s65_s9, 32 }
  0x4e   :  { %p497_p7 = scmp.ne.s32.totalorder %s65_s9, %s496_s26  ;;  %p501_p8 = scmp.lt.s32.totalorder %s65_s9, %s65_s9 }
  0x4f   :  { %p502_p9 = scmp.lt.s32.totalorder %s500_s27, %s496_s26 }
  0x51   :  { %p503_p10 = por %p502_p9, %p501_p8 }
  0x53   :  { %p504_p11 = pnand %p503_p10, %p497_p7 }
  0x55   :  { %507 = shalt.err (!%p504_p11)
}
  0x56   :  { %67 = dma.hbm_to_vmem [thread:$0]  %s695_s4, 16, %s65_s9, [#allocation9]  }
  0x57   :  { %530 = dma.done.wait [#allocation3], 1024  }
  0x58   :  { %531 = vsyncadd [#allocation3], 4294966272 }
  0x59   :  { %532 = dma.done.wait [#allocation6], 272  }
  0x5a   :  { %533 = vsyncadd [#allocation6], 4294967024 }
  0x5b   :  { %534 = dma.done.wait [#allocation9], 144  }
  0x5c   :  { %535 = vsyncadd [#allocation9], 4294967152  ;;  %v644_v0 = vld [vmem:[#allocation2 + $0x20] sm:$0xff]  ;;  %v646_v1 = vld [vmem:[#allocation2 + $0x28] sm:$0xff]  ;;  %v547_v15 = vmov 0.0|0.0   ;;  %vm548_vm0 = vmmov 0   ;;  %v120_v17 = vlaneseq }
  0x5d   :  { %v648_v2 = vld [vmem:[#allocation2] sm:$0xff]  ;;  %v97_v3 = vadd.f32 %v646_v1, %v644_v0  ;;  %v652_v4 = vld [vmem:[#allocation2 + $0x8] sm:$0xff]  ;;  %v654_v5 = vld [vmem:[#allocation2 + $0x30] sm:$0xff]  ;;  %382 = vmatprep.subr.bf16.mxu0 %v547_v15  ;;  %v549_v16 = vmov 0.0   ;;  %vm131_vm1 = vcmask 130112   ;;  %vm142_vm2 = vcmask 1041409  }
  0x5e   :  { %v656_v6 = vld [vmem:[#allocation2 + $0x38] sm:$0xff]  ;;  %v91_v7 = vadd.f32 %v652_v4, %v648_v2  ;;  %v660_v8 = vld [vmem:[#allocation2 + $0x10] sm:$0xff]  ;;  %v107_v12 = vld [vmem:[#allocation5] sm:$0xff]  ;;  %374 = vmatprep.mubr.msk.f32.mxu0 %vm548_vm0, %v549_v16  ;;  %377 = vmatprep.subr.mxu1 %v549_v16  ;;  %v121_v18 = vand.u32 127, %v120_v17  ;;  %v123_v19 = vshrl.u32 %v120_v17, 7  ;;  %vm144_vm3 = vcmask 130048  }
  0x5f   :  { %v662_v9 = vld [vmem:[#allocation2 + $0x18] sm:$0xff]  ;;  %98 = vadd.xlane.f32.xlu1 %v97_v3  ;;  %v100_v10 = vadd.f32 %v656_v6, %v654_v5  ;;  %v108_v13 = vld [vmem:[#allocation5 + $0x8] sm:$0xff]  ;;  %379 = vmatprep.mubr.msk.f32.mxu1 %vm548_vm0, %v549_v16  ;;  %v361_v39 = vld [vmem:[#allocation7] ss:$0 sm:$0xff]  ;;  %vm226_vm4 = vcmask 64512   ;;  %s550_s4 = smov [#allocation11]  }
  0x60   :  { %92 = vadd.xlane.f32.xlu0 %v91_v7  ;;  %v94_v11 = vadd.f32 %v662_v9, %v660_v8  ;;  %v383_v14 = vpack.c.bf16 %v108_v13, %v107_v12  ;;  %v126_v20 = vadd.s32 4294967288, %v121_v18  ;;  %v124_v23 = vsub.s32 %v121_v18, %v123_v19  ;;  %v218_v38 = vld [vmem:[#allocation8] sm:$0xff]  ;;  %v363_v44 = vld [vmem:[#allocation10] ss:$0 sm:$0xff]  ;;  %s347_s30 = sshll.u32 %s550_s4, 4  ;;  %s348_s30 = int_to_ptr.vmem [resolvable:$true] %s347_s30 }
  0x61   :  { %378 = vmatpush3.msra.mxu1 %v218_v38  ;;  %v306_v51 = vsub.s32 0, %v123_v19  ;;  %v317_v54 = vsub.s32 1, %v123_v19  ;;  %s508_s6 = scalar_lea.vmem %s348_s30, 1024  ;;  %p513_p13 = scmp.lt.s32.totalorder %s348_s30, %s348_s30 }
  0x62   :  { %384 = vmatpush3.bf16.msra.mxu0 %v383_v14  ;;  %v129_v25 = vsub.s32 %v126_v20, %v123_v19  ;;  %p509_p12 = scmp.ne.s32.totalorder %s348_s30, %s508_s6  ;;  %p514_p0 = scmp.lt.s32.totalorder %s508_s6, %s508_s6 }
  0x63   :  { %101 = vadd.xlane.f32.xlu1 %v100_v10 }
  0x64   :  { %95 = vadd.xlane.f32.xlu0 %v94_v11  ;;  %p515_p1 = por %p514_p0, %p513_p13 }
  0x66   :  { %p516_p2 = pnand %p515_p1, %p509_p12 }
  0xec   :  { %v99_v21 = vpop.xlane.xlu1 %98 }
  0xed   :  { %v93_v22 = vpop.xlane.xlu0 %92  ;;  %v105_v24 = vmul.f32 0.00390625, %v99_v21 }
  0xee   :  { %v103_v26 = vmul.f32 0.00390625, %v93_v22 }
  0xef   :  { %v136_v31 = vrot.slane %v105_v24, %v124_v23 }
  0xf0   :  { %v102_v27 = vpop.xlane.xlu1 %101  ;;  %v125_v33 = vrot.slane %v103_v26, %v124_v23 }
  0xf1   :  { %v106_v28 = vmul.f32 0.00390625, %v102_v27  ;;  %v96_v29 = vpop.xlane.xlu0 %95 }
  0xf2   :  { %v104_v30 = vmul.f32 0.00390625, %v96_v29 }
  0xf3   :  { %v140_v32 = vrot.slane %v106_v28, %v129_v25 }
  0xf4   :  { %v130_v34 = vrot.slane %v104_v30, %v129_v25 }
  0xf5   :  { %v141_v35 = vsel %vm131_vm1, %v140_v32, %v136_v31 }
  0xf6   :  { %v132_v36 = vsel %vm131_vm1, %v130_v34, %v125_v33 }
  0xf7   :  { %v143_v37 = vsel %vm142_vm2, %v141_v35, %v132_v36 }
  0xf8   :  { %375 = vmatmul.mubr.msk.f32.vlgmr.msra.gmra.mrb[0].mxu0 %vm144_vm3, %v143_v37 }
 0x1cb   :  { %v213_v40 = vpop.f32.mrb[0].mxu0 }
 0x1cc   :  { %v214_v41 = vadd.f32 %v361_v39, %v213_v40  ;;  %v376_v42 = vpop.f32.mrb[1].mxu0 }
 0x1ce   :  { %v217_v43 = vmax.f32 %v214_v41, 0.0 }
 0x1d0   :  { %380 = vmatmul.mubr.msk.f32.vlgmr.msra.gmra.mrb[0].mxu1 %vm226_vm4, %v217_v43 }
 0x2a3   :  { %v296_v45 = vpop.f32.mrb[0].mxu1 }
 0x2a4   :  { %v297_v46 = vadd.f32 %v363_v44, %v296_v45  ;;  %v381_v47 = vpop.f32.mrb[1].mxu1 }
 0x2a6   :  { %v300_v48 = vadd.f32 3.0, %v297_v46 }
 0x2a8   :  { %v301_v49 = vmul.f32 0.16666667, %v300_v48 }
 0x2aa   :  { %v302_v50 = vmax.f32 %v301_v49, 0.0 }
 0x2ac   :  { %v303_v52 = vmin.f32 %v302_v50, 1.0 }
 0x2ae   :  { %v307_v53 = vrot.slane %v303_v52, %v306_v51  ;;  %v318_v55 = vrot.slane %v303_v52, %v317_v54 }
 0x2b0   :  { %313 = vbcast.lane.b32.xlu1 %v307_v53, 264  ;;  %309 = vbcast.lane.b32.xlu0 %v307_v53, 256 }
 0x2b4   :  { %320 = vbcast.lane.b32.xlu1 %v318_v55, 256 }
 0x2b8   :  { %324 = vbcast.lane.b32.xlu1 %v318_v55, 264 }
 0x322   :  { %v314_v56 = vpop.permute.xlu1 %313  ;;  %v310_v57 = vpop.permute.xlu0 %309 }
 0x323   :  { %v328_v58 = vmul.f32 %v314_v56, %v660_v8  ;;  %v329_v59 = vmul.f32 %v314_v56, %v662_v9  ;;  %v326_v60 = vmul.f32 %v310_v57, %v648_v2  ;;  %v327_v61 = vmul.f32 %v310_v57, %v652_v4 }
 0x325   :  { %336 = vst [vmem:[#allocation11 + $0x10] sm:$0xff] %v328_v58  ;;  %337 = vst [vmem:[#allocation11 + $0x18] sm:$0xff] %v329_v59 }
 0x326   :  { %334 = vst [vmem:[#allocation11] sm:$0xff] %v326_v60  ;;  %335 = vst [vmem:[#allocation11 + $0x8] sm:$0xff] %v327_v61  ;;  %v321_v62 = vpop.permute.xlu1 %320 }
 0x327   :  { %v330_v63 = vmul.f32 %v321_v62, %v644_v0  ;;  %v331_v3 = vmul.f32 %v321_v62, %v646_v1 }
 0x329   :  { %338 = vst [vmem:[#allocation11 + $0x20] sm:$0xff] %v330_v63  ;;  %339 = vst [vmem:[#allocation11 + $0x28] sm:$0xff] %v331_v3 }
 0x32a   :  { %v325_v7 = vpop.permute.xlu1 %324 }
 0x32b   :  { %v332_v8 = vmul.f32 %v325_v7, %v654_v5  ;;  %v333_v2 = vmul.f32 %v325_v7, %v656_v6 }
 0x32d   :  { %340 = vst [vmem:[#allocation11 + $0x30] sm:$0xff] %v332_v8  ;;  %341 = vst [vmem:[#allocation11 + $0x38] sm:$0xff] %v333_v2 }
 0x32e   :  { %519 = shalt.err (!%p516_p2)
}
 0x32f   :  { %s520_s9 = scalar_lea.hbm %s696_s5, 1024 }
 0x330   :  { %p521_p3 = scmp.ne.s32.totalorder %s696_s5, %s520_s9  ;;  %p524_p4 = scmp.lt.u32.totalorder %s520_s9, %s696_s5 }
 0x332   :  { %p526_p5 = pnand %p524_p4, %p521_p3 }
 0x334   :  { %529 = shalt.err (!%p526_p5)
}
 0x335   :  { %353 = dma.vmem_to_hbm [thread:$0]  %s348_s30, 1024, %s696_s5, [#allocation4], %s543_s3, %s543_s3, %s544_s28  }
 0x336   :  { %536 = dma.done.wait [#allocation4], 1024  }
 0x337   :  { %537 = vsyncadd [#allocation4], 4294966272 }
 0x338   :  { %357 = vsyncpa [#allocation3], 1 }
 0x339   :  { %358 = vsyncpa [#allocation6], 1 }
 0x33a   :  { %359 = vsyncpa [#allocation9], 1 }
 0x33b   :  { %360 = vsyncpa [#allocation4], 1 }

</bundles_post_ra>
